<compile_context>
chip_gen: v7x
topology: tpu7x:2x2x1
jax: 0.10.0
libtpu: 0.0.40
codegen_flags: <defaults>
</compile_context>

<pallas_src>
import jax
import jax.numpy as jnp
from jax.experimental import pallas as pl
from jax.experimental.pallas import tpu as pltpu


def _lstm_mlp_kernel(x_ref, wih_ref, whh_ref, bg_ref,
                     w1_ref, b1_ref, w2_ref, b2_ref, w3_ref, b3_ref,
                     c0_ref, out_ref):
    """One batch-block of the full forward pass.

    x_ref   : (T, BB, D_in)  time-major input block
    wih_ref : (D_in, 4H)     transposed weight_ih
    whh_ref : (H, 4H)        transposed weight_hh
    bg_ref  : (1, 4H)        bias_ih + bias_hh
    w*_ref  : transposed FC weights, b*_ref row-vector biases
    c0_ref  : (BB, H)        initial cell state (first column = 1.0)
    out_ref : (BB, 1)        model output block
    """
    T, BB, D = x_ref.shape
    H = whh_ref.shape[0]

    # ---- Hoisted input projection: one big MXU call, bias folded in once. ----
    x2 = x_ref[...].reshape(T * BB, D)
    proj = (jnp.dot(x2, wih_ref[...], preferred_element_type=jnp.float32)
            + bg_ref[...])                                   # (T*BB, 4H)

    whh = whh_ref[...]                                       # loop-invariant, loaded once

    # TODO(synk): PyTorch builds h0 with shape (1, B, input_size) (a bug unless
    # input_size == hidden_size); functionally it is an all-zero initial hidden state.
    h = jnp.zeros((BB, H), jnp.float32)
    c = c0_ref[...]

    # ---- Recurrence, statically unrolled (T is small & static). ----
    for t in range(T):
        gates = proj[t * BB:(t + 1) * BB, :] + jnp.dot(
            h, whh, preferred_element_type=jnp.float32)      # (BB, 4H)
        i_g = jax.nn.sigmoid(gates[:, 0 * H:1 * H])
        f_g = jax.nn.sigmoid(gates[:, 1 * H:2 * H])
        g_g = jnp.tanh(gates[:, 2 * H:3 * H])
        o_g = jax.nn.sigmoid(gates[:, 3 * H:4 * H])
        c = f_g * c + i_g * g_g
        h = o_g * jnp.tanh(c)

    # ---- MLP head on the last hidden state: Linear -> ReLU -> Linear -> ReLU -> Linear ----
    z = jnp.maximum(
        jnp.dot(h, w1_ref[...], preferred_element_type=jnp.float32) + b1_ref[...], 0.0)
    z = jnp.maximum(
        jnp.dot(z, w2_ref[...], preferred_element_type=jnp.float32) + b2_ref[...], 0.0)
    out_ref[...] = (jnp.dot(z, w3_ref[...], preferred_element_type=jnp.float32)
                    + b3_ref[...]).astype(out_ref.dtype)


def prepare_params(params):
    """One-time conversion of PyTorch-layout parameters to the kernel layout
    (transposes + bias fold happen here, NOT on every forward call)."""
    H = params["w_hh"].shape[1]
    N = params["w1"].shape[0]
    f32 = jnp.float32
    return {
        "wih_t": jnp.asarray(params["w_ih"], f32).T,                         # (D_in, 4H)
        "whh_t": jnp.asarray(params["w_hh"], f32).T,                         # (H, 4H)
        "b_gates": (jnp.asarray(params["b_ih"], f32)
                    + jnp.asarray(params["b_hh"], f32)).reshape(1, 4 * H),   # (1, 4H)
        "w1_t": jnp.asarray(params["w1"], f32).T,                            # (H, N)
        "b1": jnp.asarray(params["b1"], f32).reshape(1, N),
        "w2_t": jnp.asarray(params["w2"], f32).T,                            # (N, N)
        "b2": jnp.asarray(params["b2"], f32).reshape(1, N),
        "w3_t": jnp.asarray(params["w3"], f32).T,                            # (N, 1)
        "b3": jnp.asarray(params["b3"], f32).reshape(1, 1),
    }


def traffic_forecasting_forward(x_btd, prep, *, batch_block=8):
    """x_btd: (B, T, D_in) batch-first input (PyTorch convention)."""
    B, T, D = x_btd.shape
    H = prep["whh_t"].shape[0]

    # Pad the batch to a multiple of the batch block (>= 8 sublanes), shard the
    # padded batch over a parallel grid axis (both TensorCores on v7x).
    bb = batch_block
    B_pad = ((B + bb - 1) // bb) * bb
    n_blocks = B_pad // bb

    x = jnp.transpose(x_btd, (1, 0, 2)).astype(jnp.float32)          # time-major (T, B, D)
    if B_pad != B:
        x = jnp.pad(x, ((0, 0), (0, B_pad - B), (0, 0)))

    # Initial cell state: zeros with c0[:, 0] = 1.0 (module sets this since lstm.bias is not None).
    c0 = jnp.zeros((B_pad, H), jnp.float32).at[:, 0].set(1.0)

    def const2d(a):
        return pl.BlockSpec(a.shape, lambda b: (0, 0))

    out = pl.pallas_call(
        _lstm_mlp_kernel,
        grid=(n_blocks,),
        out_shape=jax.ShapeDtypeStruct((B_pad, 1), jnp.float32),
        in_specs=[
            pl.BlockSpec((T, bb, D), lambda b: (0, b, 0)),           # x, batch-blocked
            const2d(prep["wih_t"]),
            const2d(prep["whh_t"]),
            const2d(prep["b_gates"]),
            const2d(prep["w1_t"]),
            const2d(prep["b1"]),
            const2d(prep["w2_t"]),
            const2d(prep["b2"]),
            const2d(prep["w3_t"]),
            const2d(prep["b3"]),
            pl.BlockSpec((bb, H), lambda b: (b, 0)),                 # c0, batch-blocked
        ],
        out_specs=pl.BlockSpec((bb, 1), lambda b: (b, 0)),
        compiler_params=pltpu.CompilerParams(
            dimension_semantics=("parallel",)),
    )(x, prep["wih_t"], prep["whh_t"], prep["b_gates"],
      prep["w1_t"], prep["b1"], prep["w2_t"], prep["b2"],
      prep["w3_t"], prep["b3"], c0)

    return out[:B]


def init_params(key, input_seq_len, lstm_units, num_nodes):
    """Deterministic synthetic parameters with the same shapes as the nn.Module."""
    ks = jax.random.split(key, 10)
    H, D, N = lstm_units, input_seq_len, num_nodes
    s = 0.1
    return {
        "w_ih": s * jax.random.normal(ks[0], (4 * H, D), jnp.float32),
        "w_hh": s * jax.random.normal(ks[1], (4 * H, H), jnp.float32),
        "b_ih": s * jax.random.normal(ks[2], (4 * H,), jnp.float32),
        "b_hh": s * jax.random.normal(ks[3], (4 * H,), jnp.float32),
        "w1":   s * jax.random.normal(ks[4], (N, H), jnp.float32),
        "b1":   s * jax.random.normal(ks[5], (N,), jnp.float32),
        "w2":   s * jax.random.normal(ks[6], (N, N), jnp.float32),
        "b2":   s * jax.random.normal(ks[7], (N,), jnp.float32),
        "w3":   s * jax.random.normal(ks[8], (1, N), jnp.float32),
        "b3":   s * jax.random.normal(ks[9], (1,), jnp.float32),
    }


def reference_forward(x_btd, params):
    """Pure-JAX reference of the PyTorch forward, for correctness checking."""
    B, T, D = x_btd.shape
    H = params["w_hh"].shape[1]
    h = jnp.zeros((B, H), jnp.float32)
    c = jnp.zeros((B, H), jnp.float32).at[:, 0].set(1.0)
    wih_t, whh_t = params["w_ih"].T, params["w_hh"].T
    b = params["b_ih"] + params["b_hh"]
    for t in range(T):
        g = x_btd[:, t, :] @ wih_t + h @ whh_t + b
        i = jax.nn.sigmoid(g[:, 0 * H:1 * H])
        f = jax.nn.sigmoid(g[:, 1 * H:2 * H])
        gg = jnp.tanh(g[:, 2 * H:3 * H])
        o = jax.nn.sigmoid(g[:, 3 * H:4 * H])
        c = f * c + i * gg
        h = o * jnp.tanh(c)
    z = jnp.maximum(h @ params["w1"].T + params["b1"], 0.0)
    z = jnp.maximum(z @ params["w2"].T + params["b2"], 0.0)
    return z @ params["w3"].T + params["b3"]


if __name__ == "__main__":
    # Shapes consistent with the module spec:
    #   input_seq_len (LSTM input_size) = 8, lstm_units = 64, num_nodes = 16
    #   x: (batch=12, timesteps=6, input_seq_len=8)
    # B=12 deliberately exercises batch padding (to 16) and a 2-block parallel grid.
    B, T, D_in, H, N = 12, 6, 8, 64, 16

    key = jax.random.PRNGKey(0)
    k_x, k_p = jax.random.split(key)
    x = jax.random.normal(k_x, (B, T, D_in), jnp.float32)
    params = init_params(k_p, D_in, H, N)
    prep = prepare_params(params)          # one-time weight transposes / bias fold

    out = jax.block_until_ready(traffic_forecasting_forward(x, prep))

    ref = reference_forward(x, params)
    assert out.shape == (B, 1), out.shape
    assert jnp.allclose(out, ref, atol=5e-4, rtol=5e-4), (out, ref)

    print("KERNEL_OK")
</pallas_src>

<mosaic_0001>
module attributes {stable_mosaic.version = 11 : i64} {
  func.func @_lstm_mlp_kernel(%arg0: i32, %arg1: memref<6x8x8xf32, #tpu.memory_space<vmem>>, %arg2: memref<8x256xf32, #tpu.memory_space<vmem>>, %arg3: memref<64x256xf32, #tpu.memory_space<vmem>>, %arg4: memref<1x256xf32, #tpu.memory_space<vmem>>, %arg5: memref<64x16xf32, #tpu.memory_space<vmem>>, %arg6: memref<1x16xf32, #tpu.memory_space<vmem>>, %arg7: memref<16x16xf32, #tpu.memory_space<vmem>>, %arg8: memref<1x16xf32, #tpu.memory_space<vmem>>, %arg9: memref<16x1xf32, #tpu.memory_space<vmem>>, %arg10: memref<1x1xf32, #tpu.memory_space<vmem>>, %arg11: memref<8x64xf32, #tpu.memory_space<vmem>>, %arg12: memref<8x1xf32, #tpu.memory_space<vmem>>) attributes {dimension_semantics = [#tpu.dimension_semantics<parallel>], iteration_bounds = array<i64: 2>, scalar_prefetch = 0 : i64, scratch_operands = 0 : i64, tpu.core_type = #tpu.core_type<tc>, window_params = [{transform_indices = @transform_0, window_bounds = array<i64: 6, 8, 8>}, {pipeline_mode = #tpu.pipeline_mode<synchronous>, transform_indices = @transform_1, window_bounds = array<i64: 8, 256>}, {pipeline_mode = #tpu.pipeline_mode<synchronous>, transform_indices = @transform_2, window_bounds = array<i64: 64, 256>}, {pipeline_mode = #tpu.pipeline_mode<synchronous>, transform_indices = @transform_3, window_bounds = array<i64: 1, 256>}, {pipeline_mode = #tpu.pipeline_mode<synchronous>, transform_indices = @transform_4, window_bounds = array<i64: 64, 16>}, {pipeline_mode = #tpu.pipeline_mode<synchronous>, transform_indices = @transform_5, window_bounds = array<i64: 1, 16>}, {pipeline_mode = #tpu.pipeline_mode<synchronous>, transform_indices = @transform_6, window_bounds = array<i64: 16, 16>}, {pipeline_mode = #tpu.pipeline_mode<synchronous>, transform_indices = @transform_7, window_bounds = array<i64: 1, 16>}, {pipeline_mode = #tpu.pipeline_mode<synchronous>, transform_indices = @transform_8, window_bounds = array<i64: 16, 1>}, {pipeline_mode = #tpu.pipeline_mode<synchronous>, transform_indices = @transform_9, window_bounds = array<i64: 1, 1>}, {transform_indices = @transform_10, window_bounds = array<i64: 8, 64>}, {transform_indices = @transform_11, window_bounds = array<i64: 8, 1>}]} {
    %c0 = arith.constant 0 : index
    %c0_0 = arith.constant 0 : index
    %c0_1 = arith.constant 0 : index
    %0 = vector.load %arg1[%c0, %c0_0, %c0_1] : memref<6x8x8xf32, #tpu.memory_space<vmem>>, vector<6x8x8xf32>
    %1 = vector.shape_cast %0 : vector<6x8x8xf32> to vector<48x8xf32>
    %c0_2 = arith.constant 0 : index
    %c0_3 = arith.constant 0 : index
    %2 = vector.load %arg2[%c0_2, %c0_3] : memref<8x256xf32, #tpu.memory_space<vmem>>, vector<8x256xf32>
    %cst = arith.constant dense<0.000000e+00> : vector<48x256xf32>
    %3 = tpu.matmul %1, %2, %cst {dimension_numbers = #tpu.dot_dimension_numbers<[1], [0], [0], [1], [0, 0, 1, 1], [], []>} : vector<48x8xf32>, vector<8x256xf32>, vector<48x256xf32> -> vector<48x256xf32>
    %c0_4 = arith.constant 0 : index
    %c0_5 = arith.constant 0 : index
    %4 = vector.load %arg4[%c0_4, %c0_5] : memref<1x256xf32, #tpu.memory_space<vmem>>, vector<1x256xf32>
    %5 = vector.broadcast %4 : vector<1x256xf32> to vector<48x256xf32>
    %6 = arith.addf %3, %5 : vector<48x256xf32>
    %c0_6 = arith.constant 0 : index
    %c0_7 = arith.constant 0 : index
    %7 = vector.load %arg3[%c0_6, %c0_7] : memref<64x256xf32, #tpu.memory_space<vmem>>, vector<64x256xf32>
    %cst_8 = arith.constant 0.000000e+00 : f32
    %8 = vector.broadcast %cst_8 : f32 to vector<8x64xf32>
    %c0_9 = arith.constant 0 : index
    %c0_10 = arith.constant 0 : index
    %9 = vector.load %arg11[%c0_9, %c0_10] : memref<8x64xf32, #tpu.memory_space<vmem>>, vector<8x64xf32>
    %10 = vector.extract_strided_slice %6 {offsets = [0, 0], sizes = [8, 256], strides = [1, 1]} : vector<48x256xf32> to vector<8x256xf32>
    %cst_11 = arith.constant dense<0.000000e+00> : vector<8x256xf32>
    %11 = tpu.matmul %8, %7, %cst_11 {dimension_numbers = #tpu.dot_dimension_numbers<[1], [0], [0], [1], [0, 0, 1, 1], [], []>} : vector<8x64xf32>, vector<64x256xf32>, vector<8x256xf32> -> vector<8x256xf32>
    %12 = arith.addf %10, %11 : vector<8x256xf32>
    %13 = vector.extract_strided_slice %12 {offsets = [0, 0], sizes = [8, 64], strides = [1, 1]} : vector<8x256xf32> to vector<8x64xf32>
    %14 = arith.negf %13 : vector<8x64xf32>
    %15 = math.exp %14 : vector<8x64xf32>
    %cst_12 = arith.constant 1.000000e+00 : f32
    %16 = vector.broadcast %cst_12 : f32 to vector<8x64xf32>
    %17 = arith.addf %16, %15 : vector<8x64xf32>
    %18 = arith.divf %16, %17 : vector<8x64xf32>
    %19 = vector.extract_strided_slice %12 {offsets = [0, 64], sizes = [8, 64], strides = [1, 1]} : vector<8x256xf32> to vector<8x64xf32>
    %20 = arith.negf %19 : vector<8x64xf32>
    %21 = math.exp %20 : vector<8x64xf32>
    %cst_13 = arith.constant 1.000000e+00 : f32
    %22 = vector.broadcast %cst_13 : f32 to vector<8x64xf32>
    %23 = arith.addf %22, %21 : vector<8x64xf32>
    %24 = arith.divf %22, %23 : vector<8x64xf32>
    %25 = vector.extract_strided_slice %12 {offsets = [0, 128], sizes = [8, 64], strides = [1, 1]} : vector<8x256xf32> to vector<8x64xf32>
    %26 = math.tanh %25 : vector<8x64xf32>
    %27 = vector.extract_strided_slice %12 {offsets = [0, 192], sizes = [8, 64], strides = [1, 1]} : vector<8x256xf32> to vector<8x64xf32>
    %28 = arith.negf %27 : vector<8x64xf32>
    %29 = math.exp %28 : vector<8x64xf32>
    %cst_14 = arith.constant 1.000000e+00 : f32
    %30 = vector.broadcast %cst_14 : f32 to vector<8x64xf32>
    %31 = arith.addf %30, %29 : vector<8x64xf32>
    %32 = arith.divf %30, %31 : vector<8x64xf32>
    %33 = arith.mulf %24, %9 : vector<8x64xf32>
    %34 = arith.mulf %18, %26 : vector<8x64xf32>
    %35 = arith.addf %33, %34 : vector<8x64xf32>
    %36 = math.tanh %35 : vector<8x64xf32>
    %37 = arith.mulf %32, %36 : vector<8x64xf32>
    %38 = vector.extract_strided_slice %6 {offsets = [8, 0], sizes = [8, 256], strides = [1, 1]} : vector<48x256xf32> to vector<8x256xf32>
    %cst_15 = arith.constant dense<0.000000e+00> : vector<8x256xf32>
    %39 = tpu.matmul %37, %7, %cst_15 {dimension_numbers = #tpu.dot_dimension_numbers<[1], [0], [0], [1], [0, 0, 1, 1], [], []>} : vector<8x64xf32>, vector<64x256xf32>, vector<8x256xf32> -> vector<8x256xf32>
    %40 = arith.addf %38, %39 : vector<8x256xf32>
    %41 = vector.extract_strided_slice %40 {offsets = [0, 0], sizes = [8, 64], strides = [1, 1]} : vector<8x256xf32> to vector<8x64xf32>
    %42 = arith.negf %41 : vector<8x64xf32>
    %43 = math.exp %42 : vector<8x64xf32>
    %cst_16 = arith.constant 1.000000e+00 : f32
    %44 = vector.broadcast %cst_16 : f32 to vector<8x64xf32>
    %45 = arith.addf %44, %43 : vector<8x64xf32>
    %46 = arith.divf %44, %45 : vector<8x64xf32>
    %47 = vector.extract_strided_slice %40 {offsets = [0, 64], sizes = [8, 64], strides = [1, 1]} : vector<8x256xf32> to vector<8x64xf32>
    %48 = arith.negf %47 : vector<8x64xf32>
    %49 = math.exp %48 : vector<8x64xf32>
    %cst_17 = arith.constant 1.000000e+00 : f32
    %50 = vector.broadcast %cst_17 : f32 to vector<8x64xf32>
    %51 = arith.addf %50, %49 : vector<8x64xf32>
    %52 = arith.divf %50, %51 : vector<8x64xf32>
    %53 = vector.extract_strided_slice %40 {offsets = [0, 128], sizes = [8, 64], strides = [1, 1]} : vector<8x256xf32> to vector<8x64xf32>
    %54 = math.tanh %53 : vector<8x64xf32>
    %55 = vector.extract_strided_slice %40 {offsets = [0, 192], sizes = [8, 64], strides = [1, 1]} : vector<8x256xf32> to vector<8x64xf32>
    %56 = arith.negf %55 : vector<8x64xf32>
    %57 = math.exp %56 : vector<8x64xf32>
    %cst_18 = arith.constant 1.000000e+00 : f32
    %58 = vector.broadcast %cst_18 : f32 to vector<8x64xf32>
    %59 = arith.addf %58, %57 : vector<8x64xf32>
    %60 = arith.divf %58, %59 : vector<8x64xf32>
    %61 = arith.mulf %52, %35 : vector<8x64xf32>
    %62 = arith.mulf %46, %54 : vector<8x64xf32>
    %63 = arith.addf %61, %62 : vector<8x64xf32>
    %64 = math.tanh %63 : vector<8x64xf32>
    %65 = arith.mulf %60, %64 : vector<8x64xf32>
    %66 = vector.extract_strided_slice %6 {offsets = [16, 0], sizes = [8, 256], strides = [1, 1]} : vector<48x256xf32> to vector<8x256xf32>
    %cst_19 = arith.constant dense<0.000000e+00> : vector<8x256xf32>
    %67 = tpu.matmul %65, %7, %cst_19 {dimension_numbers = #tpu.dot_dimension_numbers<[1], [0], [0], [1], [0, 0, 1, 1], [], []>} : vector<8x64xf32>, vector<64x256xf32>, vector<8x256xf32> -> vector<8x256xf32>
    %68 = arith.addf %66, %67 : vector<8x256xf32>
    %69 = vector.extract_strided_slice %68 {offsets = [0, 0], sizes = [8, 64], strides = [1, 1]} : vector<8x256xf32> to vector<8x64xf32>
    %70 = arith.negf %69 : vector<8x64xf32>
    %71 = math.exp %70 : vector<8x64xf32>
    %cst_20 = arith.constant 1.000000e+00 : f32
    %72 = vector.broadcast %cst_20 : f32 to vector<8x64xf32>
    %73 = arith.addf %72, %71 : vector<8x64xf32>
    %74 = arith.divf %72, %73 : vector<8x64xf32>
    %75 = vector.extract_strided_slice %68 {offsets = [0, 64], sizes = [8, 64], strides = [1, 1]} : vector<8x256xf32> to vector<8x64xf32>
    %76 = arith.negf %75 : vector<8x64xf32>
    %77 = math.exp %76 : vector<8x64xf32>
    %cst_21 = arith.constant 1.000000e+00 : f32
    %78 = vector.broadcast %cst_21 : f32 to vector<8x64xf32>
    %79 = arith.addf %78, %77 : vector<8x64xf32>
    %80 = arith.divf %78, %79 : vector<8x64xf32>
    %81 = vector.extract_strided_slice %68 {offsets = [0, 128], sizes = [8, 64], strides = [1, 1]} : vector<8x256xf32> to vector<8x64xf32>
    %82 = math.tanh %81 : vector<8x64xf32>
    %83 = vector.extract_strided_slice %68 {offsets = [0, 192], sizes = [8, 64], strides = [1, 1]} : vector<8x256xf32> to vector<8x64xf32>
    %84 = arith.negf %83 : vector<8x64xf32>
    %85 = math.exp %84 : vector<8x64xf32>
    %cst_22 = arith.constant 1.000000e+00 : f32
    %86 = vector.broadcast %cst_22 : f32 to vector<8x64xf32>
    %87 = arith.addf %86, %85 : vector<8x64xf32>
    %88 = arith.divf %86, %87 : vector<8x64xf32>
    %89 = arith.mulf %80, %63 : vector<8x64xf32>
    %90 = arith.mulf %74, %82 : vector<8x64xf32>
    %91 = arith.addf %89, %90 : vector<8x64xf32>
    %92 = math.tanh %91 : vector<8x64xf32>
    %93 = arith.mulf %88, %92 : vector<8x64xf32>
    %94 = vector.extract_strided_slice %6 {offsets = [24, 0], sizes = [8, 256], strides = [1, 1]} : vector<48x256xf32> to vector<8x256xf32>
    %cst_23 = arith.constant dense<0.000000e+00> : vector<8x256xf32>
    %95 = tpu.matmul %93, %7, %cst_23 {dimension_numbers = #tpu.dot_dimension_numbers<[1], [0], [0], [1], [0, 0, 1, 1], [], []>} : vector<8x64xf32>, vector<64x256xf32>, vector<8x256xf32> -> vector<8x256xf32>
    %96 = arith.addf %94, %95 : vector<8x256xf32>
    %97 = vector.extract_strided_slice %96 {offsets = [0, 0], sizes = [8, 64], strides = [1, 1]} : vector<8x256xf32> to vector<8x64xf32>
    %98 = arith.negf %97 : vector<8x64xf32>
    %99 = math.exp %98 : vector<8x64xf32>
    %cst_24 = arith.constant 1.000000e+00 : f32
    %100 = vector.broadcast %cst_24 : f32 to vector<8x64xf32>
    %101 = arith.addf %100, %99 : vector<8x64xf32>
    %102 = arith.divf %100, %101 : vector<8x64xf32>
    %103 = vector.extract_strided_slice %96 {offsets = [0, 64], sizes = [8, 64], strides = [1, 1]} : vector<8x256xf32> to vector<8x64xf32>
    %104 = arith.negf %103 : vector<8x64xf32>
    %105 = math.exp %104 : vector<8x64xf32>
    %cst_25 = arith.constant 1.000000e+00 : f32
    %106 = vector.broadcast %cst_25 : f32 to vector<8x64xf32>
    %107 = arith.addf %106, %105 : vector<8x64xf32>
    %108 = arith.divf %106, %107 : vector<8x64xf32>
    %109 = vector.extract_strided_slice %96 {offsets = [0, 128], sizes = [8, 64], strides = [1, 1]} : vector<8x256xf32> to vector<8x64xf32>
    %110 = math.tanh %109 : vector<8x64xf32>
    %111 = vector.extract_strided_slice %96 {offsets = [0, 192], sizes = [8, 64], strides = [1, 1]} : vector<8x256xf32> to vector<8x64xf32>
    %112 = arith.negf %111 : vector<8x64xf32>
    %113 = math.exp %112 : vector<8x64xf32>
    %cst_26 = arith.constant 1.000000e+00 : f32
    %114 = vector.broadcast %cst_26 : f32 to vector<8x64xf32>
    %115 = arith.addf %114, %113 : vector<8x64xf32>
    %116 = arith.divf %114, %115 : vector<8x64xf32>
    %117 = arith.mulf %108, %91 : vector<8x64xf32>
    %118 = arith.mulf %102, %110 : vector<8x64xf32>
    %119 = arith.addf %117, %118 : vector<8x64xf32>
    %120 = math.tanh %119 : vector<8x64xf32>
    %121 = arith.mulf %116, %120 : vector<8x64xf32>
    %122 = vector.extract_strided_slice %6 {offsets = [32, 0], sizes = [8, 256], strides = [1, 1]} : vector<48x256xf32> to vector<8x256xf32>
    %cst_27 = arith.constant dense<0.000000e+00> : vector<8x256xf32>
    %123 = tpu.matmul %121, %7, %cst_27 {dimension_numbers = #tpu.dot_dimension_numbers<[1], [0], [0], [1], [0, 0, 1, 1], [], []>} : vector<8x64xf32>, vector<64x256xf32>, vector<8x256xf32> -> vector<8x256xf32>
    %124 = arith.addf %122, %123 : vector<8x256xf32>
    %125 = vector.extract_strided_slice %124 {offsets = [0, 0], sizes = [8, 64], strides = [1, 1]} : vector<8x256xf32> to vector<8x64xf32>
    %126 = arith.negf %125 : vector<8x64xf32>
    %127 = math.exp %126 : vector<8x64xf32>
    %cst_28 = arith.constant 1.000000e+00 : f32
    %128 = vector.broadcast %cst_28 : f32 to vector<8x64xf32>
    %129 = arith.addf %128, %127 : vector<8x64xf32>
    %130 = arith.divf %128, %129 : vector<8x64xf32>
    %131 = vector.extract_strided_slice %124 {offsets = [0, 64], sizes = [8, 64], strides = [1, 1]} : vector<8x256xf32> to vector<8x64xf32>
    %132 = arith.negf %131 : vector<8x64xf32>
    %133 = math.exp %132 : vector<8x64xf32>
    %cst_29 = arith.constant 1.000000e+00 : f32
    %134 = vector.broadcast %cst_29 : f32 to vector<8x64xf32>
    %135 = arith.addf %134, %133 : vector<8x64xf32>
    %136 = arith.divf %134, %135 : vector<8x64xf32>
    %137 = vector.extract_strided_slice %124 {offsets = [0, 128], sizes = [8, 64], strides = [1, 1]} : vector<8x256xf32> to vector<8x64xf32>
    %138 = math.tanh %137 : vector<8x64xf32>
    %139 = vector.extract_strided_slice %124 {offsets = [0, 192], sizes = [8, 64], strides = [1, 1]} : vector<8x256xf32> to vector<8x64xf32>
    %140 = arith.negf %139 : vector<8x64xf32>
    %141 = math.exp %140 : vector<8x64xf32>
    %cst_30 = arith.constant 1.000000e+00 : f32
    %142 = vector.broadcast %cst_30 : f32 to vector<8x64xf32>
    %143 = arith.addf %142, %141 : vector<8x64xf32>
    %144 = arith.divf %142, %143 : vector<8x64xf32>
    %145 = arith.mulf %136, %119 : vector<8x64xf32>
    %146 = arith.mulf %130, %138 : vector<8x64xf32>
    %147 = arith.addf %145, %146 : vector<8x64xf32>
    %148 = math.tanh %147 : vector<8x64xf32>
    %149 = arith.mulf %144, %148 : vector<8x64xf32>
    %150 = vector.extract_strided_slice %6 {offsets = [40, 0], sizes = [8, 256], strides = [1, 1]} : vector<48x256xf32> to vector<8x256xf32>
    %cst_31 = arith.constant dense<0.000000e+00> : vector<8x256xf32>
    %151 = tpu.matmul %149, %7, %cst_31 {dimension_numbers = #tpu.dot_dimension_numbers<[1], [0], [0], [1], [0, 0, 1, 1], [], []>} : vector<8x64xf32>, vector<64x256xf32>, vector<8x256xf32> -> vector<8x256xf32>
    %152 = arith.addf %150, %151 : vector<8x256xf32>
    %153 = vector.extract_strided_slice %152 {offsets = [0, 0], sizes = [8, 64], strides = [1, 1]} : vector<8x256xf32> to vector<8x64xf32>
    %154 = arith.negf %153 : vector<8x64xf32>
    %155 = math.exp %154 : vector<8x64xf32>
    %cst_32 = arith.constant 1.000000e+00 : f32
    %156 = vector.broadcast %cst_32 : f32 to vector<8x64xf32>
    %157 = arith.addf %156, %155 : vector<8x64xf32>
    %158 = arith.divf %156, %157 : vector<8x64xf32>
    %159 = vector.extract_strided_slice %152 {offsets = [0, 64], sizes = [8, 64], strides = [1, 1]} : vector<8x256xf32> to vector<8x64xf32>
    %160 = arith.negf %159 : vector<8x64xf32>
    %161 = math.exp %160 : vector<8x64xf32>
    %cst_33 = arith.constant 1.000000e+00 : f32
    %162 = vector.broadcast %cst_33 : f32 to vector<8x64xf32>
    %163 = arith.addf %162, %161 : vector<8x64xf32>
    %164 = arith.divf %162, %163 : vector<8x64xf32>
    %165 = vector.extract_strided_slice %152 {offsets = [0, 128], sizes = [8, 64], strides = [1, 1]} : vector<8x256xf32> to vector<8x64xf32>
    %166 = math.tanh %165 : vector<8x64xf32>
    %167 = vector.extract_strided_slice %152 {offsets = [0, 192], sizes = [8, 64], strides = [1, 1]} : vector<8x256xf32> to vector<8x64xf32>
    %168 = arith.negf %167 : vector<8x64xf32>
    %169 = math.exp %168 : vector<8x64xf32>
    %cst_34 = arith.constant 1.000000e+00 : f32
    %170 = vector.broadcast %cst_34 : f32 to vector<8x64xf32>
    %171 = arith.addf %170, %169 : vector<8x64xf32>
    %172 = arith.divf %170, %171 : vector<8x64xf32>
    %173 = arith.mulf %164, %147 : vector<8x64xf32>
    %174 = arith.mulf %158, %166 : vector<8x64xf32>
    %175 = arith.addf %173, %174 : vector<8x64xf32>
    %176 = math.tanh %175 : vector<8x64xf32>
    %177 = arith.mulf %172, %176 : vector<8x64xf32>
    %c0_35 = arith.constant 0 : index
    %c0_36 = arith.constant 0 : index
    %178 = vector.load %arg5[%c0_35, %c0_36] : memref<64x16xf32, #tpu.memory_space<vmem>>, vector<64x16xf32>
    %cst_37 = arith.constant dense<0.000000e+00> : vector<8x16xf32>
    %179 = tpu.matmul %177, %178, %cst_37 {dimension_numbers = #tpu.dot_dimension_numbers<[1], [0], [0], [1], [0, 0, 1, 1], [], []>} : vector<8x64xf32>, vector<64x16xf32>, vector<8x16xf32> -> vector<8x16xf32>
    %c0_38 = arith.constant 0 : index
    %c0_39 = arith.constant 0 : index
    %180 = vector.load %arg6[%c0_38, %c0_39] : memref<1x16xf32, #tpu.memory_space<vmem>>, vector<1x16xf32>
    %181 = vector.broadcast %180 : vector<1x16xf32> to vector<8x16xf32>
    %182 = arith.addf %179, %181 : vector<8x16xf32>
    %cst_40 = arith.constant 0.000000e+00 : f32
    %183 = vector.broadcast %cst_40 : f32 to vector<8x16xf32>
    %184 = arith.maximumf %182, %183 : vector<8x16xf32>
    %c0_41 = arith.constant 0 : index
    %c0_42 = arith.constant 0 : index
    %185 = vector.load %arg7[%c0_41, %c0_42] : memref<16x16xf32, #tpu.memory_space<vmem>>, vector<16x16xf32>
    %cst_43 = arith.constant dense<0.000000e+00> : vector<8x16xf32>
    %186 = tpu.matmul %184, %185, %cst_43 {dimension_numbers = #tpu.dot_dimension_numbers<[1], [0], [0], [1], [0, 0, 1, 1], [], []>} : vector<8x16xf32>, vector<16x16xf32>, vector<8x16xf32> -> vector<8x16xf32>
    %c0_44 = arith.constant 0 : index
    %c0_45 = arith.constant 0 : index
    %187 = vector.load %arg8[%c0_44, %c0_45] : memref<1x16xf32, #tpu.memory_space<vmem>>, vector<1x16xf32>
    %188 = vector.broadcast %187 : vector<1x16xf32> to vector<8x16xf32>
    %189 = arith.addf %186, %188 : vector<8x16xf32>
    %cst_46 = arith.constant 0.000000e+00 : f32
    %190 = vector.broadcast %cst_46 : f32 to vector<8x16xf32>
    %191 = arith.maximumf %189, %190 : vector<8x16xf32>
    %c0_47 = arith.constant 0 : index
    %c0_48 = arith.constant 0 : index
    %192 = vector.load %arg9[%c0_47, %c0_48] : memref<16x1xf32, #tpu.memory_space<vmem>>, vector<16x1xf32>
    %cst_49 = arith.constant dense<0.000000e+00> : vector<8x1xf32>
    %193 = tpu.matmul %191, %192, %cst_49 {dimension_numbers = #tpu.dot_dimension_numbers<[1], [0], [0], [1], [0, 0, 1, 1], [], []>} : vector<8x16xf32>, vector<16x1xf32>, vector<8x1xf32> -> vector<8x1xf32>
    %c0_50 = arith.constant 0 : index
    %c0_51 = arith.constant 0 : index
    %194 = vector.load %arg10[%c0_50, %c0_51] : memref<1x1xf32, #tpu.memory_space<vmem>>, vector<1x1xf32>
    %195 = vector.broadcast %194 : vector<1x1xf32> to vector<8x1xf32>
    %196 = arith.addf %193, %195 : vector<8x1xf32>
    %c0_52 = arith.constant 0 : index
    %c0_53 = arith.constant 0 : index
    %197 = vector.load %arg12[%c0_52, %c0_53] : memref<8x1xf32, #tpu.memory_space<vmem>>, vector<8x1xf32>
    tpu.vector_store %arg12[%c0_52, %c0_53], %196 {strides = array<i32>} : memref<8x1xf32, #tpu.memory_space<vmem>>, vector<8x1xf32>,
    return
  }
  func.func @transform_0(%arg0: i32) -> (i32, i32, i32) {
    %c0_i32 = arith.constant 0 : i32
    %c0_i32_0 = arith.constant 0 : i32
    %c0_i32_1 = arith.constant 0 : i32
    return %c0_i32, %arg0, %c0_i32_0 : i32, i32, i32
  }
  func.func @transform_1(%arg0: i32) -> (i32, i32) {
    %c0_i32 = arith.constant 0 : i32
    %c0_i32_0 = arith.constant 0 : i32
    %c0_i32_1 = arith.constant 0 : i32
    return %c0_i32, %c0_i32_0 : i32, i32
  }
  func.func @transform_2(%arg0: i32) -> (i32, i32) {
    %c0_i32 = arith.constant 0 : i32
    %c0_i32_0 = arith.constant 0 : i32
    %c0_i32_1 = arith.constant 0 : i32
    return %c0_i32, %c0_i32_0 : i32, i32
  }
  func.func @transform_3(%arg0: i32) -> (i32, i32) {
    %c0_i32 = arith.constant 0 : i32
    %c0_i32_0 = arith.constant 0 : i32
    %c0_i32_1 = arith.constant 0 : i32
    return %c0_i32, %c0_i32_0 : i32, i32
  }
  func.func @transform_4(%arg0: i32) -> (i32, i32) {
    %c0_i32 = arith.constant 0 : i32
    %c0_i32_0 = arith.constant 0 : i32
    %c0_i32_1 = arith.constant 0 : i32
    return %c0_i32, %c0_i32_0 : i32, i32
  }
  func.func @transform_5(%arg0: i32) -> (i32, i32) {
    %c0_i32 = arith.constant 0 : i32
    %c0_i32_0 = arith.constant 0 : i32
    %c0_i32_1 = arith.constant 0 : i32
    return %c0_i32, %c0_i32_0 : i32, i32
  }
  func.func @transform_6(%arg0: i32) -> (i32, i32) {
    %c0_i32 = arith.constant 0 : i32
    %c0_i32_0 = arith.constant 0 : i32
    %c0_i32_1 = arith.constant 0 : i32
    return %c0_i32, %c0_i32_0 : i32, i32
  }
  func.func @transform_7(%arg0: i32) -> (i32, i32) {
    %c0_i32 = arith.constant 0 : i32
    %c0_i32_0 = arith.constant 0 : i32
    %c0_i32_1 = arith.constant 0 : i32
    return %c0_i32, %c0_i32_0 : i32, i32
  }
  func.func @transform_8(%arg0: i32) -> (i32, i32) {
    %c0_i32 = arith.constant 0 : i32
    %c0_i32_0 = arith.constant 0 : i32
    %c0_i32_1 = arith.constant 0 : i32
    return %c0_i32, %c0_i32_0 : i32, i32
  }
  func.func @transform_9(%arg0: i32) -> (i32, i32) {
    %c0_i32 = arith.constant 0 : i32
    %c0_i32_0 = arith.constant 0 : i32
    %c0_i32_1 = arith.constant 0 : i32
    return %c0_i32, %c0_i32_0 : i32, i32
  }
  func.func @transform_10(%arg0: i32) -> (i32, i32) {
    %c0_i32 = arith.constant 0 : i32
    %c0_i32_0 = arith.constant 0 : i32
    return %arg0, %c0_i32 : i32, i32
  }
  func.func @transform_11(%arg0: i32) -> (i32, i32) {
    %c0_i32 = arith.constant 0 : i32
    %c0_i32_0 = arith.constant 0 : i32
    return %arg0, %c0_i32 : i32, i32
  }
}

</mosaic_0001>

<bundles_post_ra>
// kernel: tpu_custom_call.1
= control target key start
LH: loop header
LB: loop body
LE: loop exit
PB: predicated region body
PF: predicated region fallthrough
CT: control target
= control target key end

     0   :  { %s2291_s0 = inlined_call_operand.vmem [shape: f32[6,16,8], index: 0, kind: input, shape index: {}]   ;;  %s2292_s1 = inlined_call_operand.vmem [shape: f32[8,256], index: 1, kind: input, shape index: {}]   ;;  %s2293_s2 = inlined_call_operand.vmem [shape: f32[64,256], index: 2, kind: input, shape index: {}]   ;;  %s2294_s3 = inlined_call_operand.vmem [shape: f32[1,256], index: 3, kind: input, shape index: {}]   ;;  %s2295_s4 = inlined_call_operand.vmem [shape: f32[64,16], index: 4, kind: input, shape index: {}]   ;;  %s2296_s5 = inlined_call_operand.vmem [shape: f32[1,16], index: 5, kind: input, shape index: {}]   ;;  %s2297_s6 = inlined_call_operand.vmem [shape: f32[16,16], index: 6, kind: input, shape index: {}]   ;;  %s2298_s7 = inlined_call_operand.vmem [shape: f32[1,16], index: 7, kind: input, shape index: {}]   ;;  %s2299_s8 = inlined_call_operand.vmem [shape: f32[16,1], index: 8, kind: input, shape index: {}]   ;;  %s2300_s9 = inlined_call_operand.<no memory space> [shape: f32[1,1], index: 9, kind: input, shape index: {}]   ;;  %s2301_s10 = inlined_call_operand.vmem [shape: f32[16,64], index: 10, kind: input, shape index: {}]   ;;  %s2302_s11 = inlined_call_operand.vmem [shape: f32[16,1], index: 11, kind: output, shape index: {}]  }
   0x1   :  { %v16_v0 = vstv %s2300_s9 }
   0x2   :  { %17 = vst [vmem:[#allocation2] sm:$0x1] %v16_v0 }
   0x3   :  { %s1966_s19 = smov 0   ;;  %s1968_s20 = smov 0  }
   0x4   :  { %s1970_s21 = smov 0  }
   0x5 LB: > { %s1548_s9 = sadd.s32 4294967295, %s1897_s21   ;;  %s1983_s22 = sadd.s32 1, %s1897_s21   ;;  %s1897_s21 = sphi %s1970_s21, %s2306_s21   ;;  %s1893_s20 = sphi %s1968_s20, %s2305_s20   ;;  %s1889_s19 = sphi %s1966_s19, %s2304_s19  }
   0x6   : > { %s27_s23 = ssub.s32 %s1897_s21, %s1983_s22  ;;  %s30_s24 = sadd.s32 1, %s1893_s20 }
   0x7   : > { %p28_p0 = scmp.eq.s32.totalorder %s27_s23, 0  ;;  %p37_p1 = scmp.ne.s32.totalorder %s1893_s20, %s1889_s19 }
   0x8   : > { %p38_p2 = scmp.eq.s32.totalorder %s1897_s21, 0  ;;  %p1551_p4 = scmp.ge.s32.totalorder %s1897_s21, 2 }
   0x9   : > { %s1992_s25 = scalar_select %p28_p0, %s1893_s20, %s30_s24  }
   0xa   : > { %p39_p3 = por %p38_p2, %p37_p1  ;;  %331 = sbr.rel (%p1551_p4) target bundleno = 24 (0x18), region = 52 }
  0x11   : > { %334 = sbr.rel (!%p39_p3) target bundleno = 24 (0x18), region = 56  ;;  %s336_s26 = sand.u32 (%p39_p3), 1, %s1893_s20  }
  0x12   : > { %s1552_s27 = sshll.u32 (%p39_p3), %s1897_s21, 3  ;;  %s1773_s28 = smul.u32 (%p39_p3), 48, %s336_s26 }
  0x13   : > { %s340_s12 = scalar_lea.vmem (%p39_p3), %s2291_s0, %s1552_s27 }
  0x14   : > { %v378_v1 = vld [vmem:[%s340_s12] sm:$0xff] (%p39_p3)  ;;  %v380_v2 = vld [vmem:[%s340_s12 + $0x10] sm:$0xff] (%p39_p3)  ;;  %s338_s13 = scalar_lea.vmem (%p39_p3), [#allocation3], %s1773_s28 }
  0x15   : > { %v382_v3 = vld [vmem:[%s340_s12 + $0x20] sm:$0xff] (%p39_p3)  ;;  %v384_v4 = vld [vmem:[%s340_s12 + $0x30] sm:$0xff] (%p39_p3)  ;;  %379 = vst [vmem:[%s338_s13] sm:$0xff] (%p39_p3), %v378_v1  ;;  %381 = vst [vmem:[%s338_s13 + $0x8] sm:$0xff] (%p39_p3), %v380_v2 }
  0x16   : > { %v386_v5 = vld [vmem:[%s340_s12 + $0x40] sm:$0xff] (%p39_p3)  ;;  %v388_v6 = vld [vmem:[%s340_s12 + $0x50] sm:$0xff] (%p39_p3)  ;;  %383 = vst [vmem:[%s338_s13 + $0x10] sm:$0xff] (%p39_p3), %v382_v3  ;;  %385 = vst [vmem:[%s338_s13 + $0x18] sm:$0xff] (%p39_p3), %v384_v4 }
  0x17   : > { %387 = vst [vmem:[%s338_s13 + $0x20] sm:$0xff] (%p39_p3), %v386_v5  ;;  %389 = vst [vmem:[%s338_s13 + $0x28] sm:$0xff] (%p39_p3), %v388_v6 }
  0x18 PF: > { %p1553_p5 = scmp.ge.s32.totalorder %s1897_s21, 1  ;;  %p401_p6 = scmp.lt.s32.totalorder %s1897_s21, 3 }
  0x1a   : > { %p402_p7 = pnand %p1553_p5, %p401_p6 }
  0x1b   : > { %v465_v7 = vld [vmem:[%s2292_s1 + $0x8] sm:$0xff] (!%p402_p7)  ;;  %v464_v8 = vld [vmem:[%s2292_s1] sm:$0xff] (!%p402_p7)  ;;  %s408_s24 = sand.u32 (!%p402_p7), 1, %s1889_s19   ;;  %v1899_v10 = vmov (!%p402_p7), 0.0   ;;  %v601_v11 = vld [vmem:[%s2293_s2 + $0x18] sm:$0xff] (!%p402_p7)  ;;  %p2024_p8 = scmp.lt.s32.totalorder (!%p402_p7), %s1548_s9, 1  ;;  %v468_v43 = vlaneseq (!%p402_p7) }
  0x1c   : > { %405 = sbr.rel (%p402_p7) target bundleno = 3626 (0xe2a), region = 98  ;;  %v599_v9 = vld [vmem:[%s2293_s2 + $0x8] sm:$0xff] (!%p402_p7)  ;;  %497 = vmatprep.subr.mxu1 (!%p402_p7), %v465_v7  ;;  %561 = vmatprep.mubr.f32.mxu1 (!%p402_p7), %v1899_v10  ;;  %v598_v12 = vld [vmem:[%s2293_s2] sm:$0xff] (!%p402_p7)  ;;  %v600_v13 = vld [vmem:[%s2293_s2 + $0x10] sm:$0xff] (!%p402_p7)  ;;  %vm478_vm0 = vcmask (!%p402_p7), 64512   ;;  %s1900_s30 = smov (!%p402_p7), 64  }
  0x1d   : > { %s1774_s28 = smul.u32 (!%p402_p7), 48, %s408_s24  ;;  %498 = vmatpush1.msra.mxu1 (!%p402_p7), %v464_v8  ;;  %v2028_v14 = vpack.c.bf16 (!%p402_p7), %v601_v11, %v599_v9  ;;  %v2030_v15 = vpack.c.bf16 (!%p402_p7), %v600_v13, %v598_v12  ;;  %v603_v16 = vld [vmem:[%s2293_s2 + $0x28] sm:$0xff] (!%p402_p7)  ;;  %v605_v17 = vld [vmem:[%s2293_s2 + $0x38] sm:$0xff] (!%p402_p7)  ;;  %887 = vmatprep.mubr.f32.mxu0 (!%p402_p7), %v1899_v10  ;;  %v602_v19 = vld [vmem:[%s2293_s2 + $0x20] sm:$0xff] (!%p402_p7)  ;;  %v469_v46 = vshrl.u32 (!%p402_p7), %v468_v43, 7  ;;  %vm615_vm1 = vcmask (!%p402_p7), 523264  }
  0x1e   : > { %v2039_v18 = vpack.c.bf16 (!%p402_p7), %v605_v17, %v603_v16  ;;  %v604_v20 = vld [vmem:[%s2293_s2 + $0x30] sm:$0xff] (!%p402_p7)  ;;  %v607_v22 = vld [vmem:[%s2293_s2 + $0x48] sm:$0xff] (!%p402_p7)  ;;  %v609_v23 = vld [vmem:[%s2293_s2 + $0x58] sm:$0xff] (!%p402_p7)  ;;  %vm1902_vm2 = vmmov (!%p402_p7), 0   ;;  %vm1318_vm3 = vcmask (!%p402_p7), 130048   ;;  %vm1475_vm4 = vcmask (!%p402_p7), 7168  }
  0x1f   : > { %1636 = vmatprep.subr.bf16.mxu1 (!%p402_p7), %v2028_v14  ;;  %s2048_s27 = scalar_lea.vmem (!%p402_p7), [#allocation3], %s1774_s28  ;;  %1668 = vmatprep.subr.bf16.mxu0 (!%p402_p7), %v2028_v14  ;;  %v2069_v25 = vpack.c.bf16 (!%p402_p7), %v604_v20, %v602_v19  ;;  %v2073_v26 = vpack.c.bf16 (!%p402_p7), %v609_v23, %v607_v22  ;;  %v606_v27 = vld [vmem:[%s2293_s2 + $0x40] sm:$0xff] (!%p402_p7)  ;;  %v608_v28 = vld [vmem:[%s2293_s2 + $0x50] sm:$0xff] (!%p402_p7)  ;;  %v611_v29 = vld [vmem:[%s2293_s2 + $0x68] sm:$0xff] (!%p402_p7)  ;;  %v470_v49 = vsub.s32 (!%p402_p7), 0, %v469_v46  ;;  %v474_v58 = vsub.s32 (!%p402_p7), 1, %v469_v46 }
  0x20   : > { %v458_v21 = vld [vmem:[%s2048_s27] sm:$0xff] (!%p402_p7)  ;;  %1670 = vmatpush1.bf16.msra.mxu0 (!%p402_p7), %v2030_v15  ;;  %v459_v24 = vld [vmem:[%s2048_s27 + $0x8] sm:$0xff] (!%p402_p7)  ;;  %v460_v32 = vld [vmem:[%s2048_s27 + $0x10] sm:$0xff] (!%p402_p7)  ;;  %v2098_v33 = vpack.c.bf16 (!%p402_p7), %v608_v28, %v606_v27 }
  0x21   : > { %1556 = vmatmul.mubr.msk.f32.vlgmr.msra.gmra.mrb[0].mxu1 (!%p402_p7), %vm478_vm0, %v458_v21  ;;  %1672 = vmatprep.subr.bf16.mxu0 (!%p402_p7), %v2039_v18  ;;  %v613_v30 = vld [vmem:[%s2293_s2 + $0x78] sm:$0xff] (!%p402_p7)  ;;  %v610_v35 = vld [vmem:[%s2293_s2 + $0x60] sm:$0xff] (!%p402_p7)  ;;  %v612_v36 = vld [vmem:[%s2293_s2 + $0x70] sm:$0xff] (!%p402_p7) }
  0x22   : > { %1638 = vmatpush1.bf16.msra.mxu1 (!%p402_p7), %v2030_v15  ;;  %567 = vmatprep.mubr.f32.mxu1 (!%p402_p7), %v1899_v10  ;;  %v2101_v34 = vpack.c.bf16 (!%p402_p7), %v613_v30, %v611_v29  ;;  %v461_v37 = vld [vmem:[%s2048_s27 + $0x18] sm:$0xff] (!%p402_p7)  ;;  %v2115_v38 = vpack.c.bf16 (!%p402_p7), %v612_v36, %v610_v35  ;;  %v462_v39 = vld [vmem:[%s2048_s27 + $0x20] sm:$0xff] (!%p402_p7)  ;;  %v463_v40 = vld [vmem:[%s2048_s27 + $0x28] sm:$0xff] (!%p402_p7) }
  0x23   : > { %s2308_s9 = smov (!%p2024_p8, %s1548_s9), 1  ;;  %1640 = vmatprep.subr.bf16.mxu1 %v2039_v18  ;;  %v466_v50 = vld [vmem:[%s2294_s3] sm:$0x3] }
  0x24   : > { %s1554_s21 = sshll.u32 %s2308_s9, 3  ;;  %1674 = vmatpush1.bf16.msra.mxu0 %v2069_v25  ;;  %v2160_v53 = vrot.slane %v466_v50, %v470_v49  ;;  %v2163_v59 = vrot.slane %v466_v50, %v474_v58 }
  0x25   : > { %s453_s18 = scalar_lea.vmem %s2301_s10, %s1554_s21  ;;  %1557 = vmatmul.mubr.msk.f32.gmra.mrb[2].mxu1 %vm478_vm0, %v459_v24  ;;  %1676 = vmatprep.subr.bf16.mxu0 %v2073_v26  ;;  %s457_s16 = scalar_lea.vmem %s2302_s11, %s1554_s21 }
  0x26   : > { %v614_v31 = vld [vmem:[%s453_s18] sm:$0xff]  ;;  %1642 = vmatpush1.bf16.msra.mxu1 %v2069_v25  ;;  %573 = vmatprep.mubr.f32.mxu1 %v1899_v10 }
  0x27   : > { %706 = vrot.lane.b32.xlu0 %v614_v31, %s1900_s30  ;;  %1644 = vmatprep.subr.bf16.mxu1 %v2073_v26 }
  0x28   : > { %1678 = vmatpush1.bf16.msra.mxu0 %v2098_v33 }
  0x29   : > { %1558 = vmatmul.mubr.msk.f32.gmra.mrb[4].mxu1 %vm478_vm0, %v460_v32  ;;  %1680 = vmatprep.subr.bf16.mxu0 %v2101_v34 }
  0x2a   : > { %579 = vmatprep.mubr.f32.mxu1 %v1899_v10  ;;  %1646 = vmatpush1.bf16.msra.mxu1 %v2098_v33 }
  0x2b   : > { %1648 = vmatprep.subr.bf16.mxu1 %v2101_v34 }
  0x2c   : > { %1682 = vmatpush1.bf16.msra.mxu0 %v2115_v38 }
  0x2d   : > { %1559 = vmatmul.mubr.msk.f32.gmra.mrb[6].mxu1 %vm478_vm0, %v461_v37  ;;  %1684 = vmatprep.subr.bf16.mxu0 %v2028_v14 }
  0x2e   : > { %585 = vmatprep.mubr.f32.mxu1 %v1899_v10  ;;  %1650 = vmatpush1.bf16.msra.mxu1 %v2115_v38 }
  0x2f   : > { %1652 = vmatprep.subr.bf16.mxu1 %v2028_v14 }
  0x31   : > { %1560 = vmatmul.mubr.msk.f32.gmra.mrb[8].mxu1 %vm478_vm0, %v462_v39 }
  0x32   : > { %591 = vmatprep.mubr.f32.mxu1 %v1899_v10 }
  0x35   : > { %1561 = vmatmul.mubr.msk.f32.gmra.mrb[10].mxu1 %vm478_vm0, %v463_v40 }
  0x36   : > { %683 = vmatprep.mubr.f32.mxu1 %v1899_v10 }
  0x39   : > { %684 = vmatmul.mubr.f32.vlgmr.msra.gmra.mrb[0].mxu1 %v1899_v10 }
  0x3a   : > { %1654 = vmatpush1.bf16.msra.mxu1 %v2030_v15  ;;  %787 = vmatprep.mubr.f32.mxu1 %v1899_v10 }
  0x3b   : > { %1656 = vmatprep.subr.bf16.mxu1 %v2039_v18 }
  0x3e   : > { %1658 = vmatpush1.bf16.msra.mxu1 %v2069_v25 }
  0x3f   : > { %1660 = vmatprep.subr.bf16.mxu1 %v2073_v26 }
  0x42   : > { %1662 = vmatpush1.bf16.msra.mxu1 %v2098_v33 }
  0x43   : > { %1664 = vmatprep.subr.bf16.mxu1 %v2101_v34 }
  0x46   : > { %1666 = vmatpush1.bf16.msra.mxu1 %v2115_v38 }
  0x99   : > { %v707_v4 = vpop.permute.xlu0 %706 }
  0xfc   : > { %v2141_v41 = vpop.f32.mrb[4].mxu1 }
  0xfd   : > { %v2143_v42 = vpop.f32.mrb[5].mxu1  ;;  %v576_v46 = vadd.f32 %v2141_v41, %v2160_v53 }
  0xfe   : > { %v578_v49 = vadd.f32 %v2143_v42, %v2163_v59 }
 0x100   : > { %v2145_v44 = vpop.f32.mrb[6].mxu1 }
 0x101   : > { %v2147_v45 = vpop.f32.mrb[7].mxu1 }
 0x104   : > { %v2149_v47 = vpop.f32.mrb[8].mxu1 }
 0x105   : > { %v2151_v48 = vpop.f32.mrb[9].mxu1 }
 0x108   : > { %v2156_v51 = vpop.f32.mrb[10].mxu1 }
 0x109   : > { %v2158_v52 = vpop.f32.mrb[11].mxu1 }
 0x10c   : > { %v685_v54 = vpop.f32.mrb[0].mxu1 }
 0x10d   : > { %v1749_v55 = vadd.f32 %v685_v54, %v2160_v53  ;;  %v687_v56 = vpop.f32.mrb[1].mxu1 }
 0x10e   : > { %v1750_v60 = vadd.f32 %v687_v56, %v2163_v59 }
 0x10f   : > { %v1562_v57 = vmul.f32 -1.442695, %v1749_v55 }
 0x110   : > { %v1563_v2 = vmul.f32 -1.442695, %v1750_v60 }
 0x111   : > { %1803 = vpow2.f32 %v1562_v57 }
 0x112   : > { %1805 = vtanh.f32 %v1750_v60 }
 0x11b   : > { %v1804_v61 = vpop.eup %1803 }
 0x11c   : > { %v695_v62 = vadd.f32 1.0, %v1804_v61  ;;  %v1806_v63 = vpop.eup %1805 }
 0x11e   : > { %1807 = vrcp.f32 %v695_v62 }
 0x11f   : > { %1809 = vpow2.f32 %v1563_v2 }
 0x128   : > { %v1808_v0 = vpop.eup %1807 }
 0x129   : > { %v710_v1 = vmul.f32 %v1808_v0, %v1806_v63  ;;  %v1810_v3 = vpop.eup %1809  ;;  %v709_v6 = vmul.f32 %v1808_v0, %v707_v4 }
 0x12a   : > { %v702_v5 = vadd.f32 1.0, %v1810_v3 }
 0x12b   : > { %712 = vrot.lane.b32.xlu0 %v710_v1, %s1900_s30 }
 0x12c   : > { %1811 = vrcp.f32 %v702_v5 }
 0x136   : > { %v1812_v9 = vpop.eup %1811 }
 0x19d   : > { %v713_v7 = vpop.permute.xlu0 %712 }
 0x19e   : > { %v715_v8 = vadd.f32 %v713_v7, %v709_v6 }
 0x1a0   : > { %1813 = vtanh.f32 %v715_v8 }
 0x1aa   : > { %v1814_v11 = vpop.eup %1813 }
 0x1ab   : > { %v717_v12 = vmul.f32 %v1814_v11, %v1812_v9  ;;  %v584_v9 = vadd.f32 %v2147_v45, %v2163_v59 }
 0x1ad   : > { %719 = vrot.lane.b32.xlu1 %v717_v12, %s1900_s30 }
 0x21f   : > { %v720_v13 = vpop.permute.xlu1 %719 }
 0x220   : > { %1564 = vmatmul.mubr.msk.f32.vlgmr.msra.gmra.mrb[2].mxu1 %vm615_vm1, %v720_v13 }
 0x221   : > { %1618 = vmatprep.mubr.msk.f32.mxu1 %vm1902_vm2, %v1899_v10 }
 0x2f3   : > { %v789_v16 = vpop.f32.mrb[2].mxu1 }
 0x2f4   : > { %v1751_v17 = vadd.f32 %v789_v16, %v2160_v53  ;;  %v791_v19 = vpop.f32.mrb[3].mxu1 }
 0x2f5   : > { %v1752_v21 = vadd.f32 %v791_v19, %v2163_v59 }
 0x2f6   : > { %v1565_v20 = vmul.f32 -1.442695, %v1751_v17 }
 0x2f7   : > { %v1566_v29 = vmul.f32 -1.442695, %v1752_v21 }
 0x2f8   : > { %1815 = vpow2.f32 %v1565_v20 }
 0x2f9   : > { %1817 = vtanh.f32 %v1752_v21 }
 0x302   : > { %v1816_v22 = vpop.eup %1815 }
 0x303   : > { %v799_v23 = vadd.f32 1.0, %v1816_v22  ;;  %v1818_v24 = vpop.eup %1817 }
 0x305   : > { %1819 = vrcp.f32 %v799_v23 }
 0x306   : > { %1821 = vpow2.f32 %v1566_v29 }
 0x30f   : > { %v1820_v27 = vpop.eup %1819 }
 0x310   : > { %v810_v28 = vmul.f32 %v1820_v27, %v1818_v24  ;;  %v1822_v30 = vpop.eup %1821  ;;  %v809_v32 = vmul.f32 %v1820_v27, %v715_v8  ;;  %v582_v8 = vadd.f32 %v2145_v44, %v2160_v53 }
 0x311   : > { %v806_v31 = vadd.f32 1.0, %v1822_v30 }
 0x312   : > { %812 = vrot.lane.b32.xlu1 %v810_v28, %s1900_s30 }
 0x313   : > { %1823 = vrcp.f32 %v806_v31 }
 0x31d   : > { %v1824_v37 = vpop.eup %1823 }
 0x384   : > { %v813_v35 = vpop.permute.xlu1 %812 }
 0x385   : > { %v815_v36 = vadd.f32 %v813_v35, %v809_v32  ;;  %v588_v35 = vadd.f32 %v2149_v47, %v2160_v53 }
 0x387   : > { %1825 = vtanh.f32 %v815_v36 }
 0x391   : > { %v1826_v39 = vpop.eup %1825 }
 0x392   : > { %v817_v40 = vmul.f32 %v1826_v39, %v1824_v37 }
 0x394   : > { %819 = vrot.lane.b32.xlu0 %v817_v40, %s1900_s30 }
 0x406   : > { %v820_v43 = vpop.permute.xlu0 %819 }
 0x407   : > { %1567 = vmatmul.mubr.msk.f32.vlgmr.msra.gmra.mrb[0].mxu0 %vm615_vm1, %v820_v43 }
 0x408   : > { %1686 = vmatpush1.bf16.msra.mxu0 %v2030_v15  ;;  %987 = vmatprep.mubr.f32.mxu0 %v1899_v10 }
 0x409   : > { %1688 = vmatprep.subr.bf16.mxu0 %v2039_v18 }
 0x40c   : > { %1690 = vmatpush1.bf16.msra.mxu0 %v2069_v25 }
 0x40d   : > { %1692 = vmatprep.subr.bf16.mxu0 %v2073_v26 }
 0x410   : > { %1694 = vmatpush1.bf16.msra.mxu0 %v2098_v33 }
 0x411   : > { %1696 = vmatprep.subr.bf16.mxu0 %v2101_v34 }
 0x414   : > { %1698 = vmatpush1.bf16.msra.mxu0 %v2115_v38 }
 0x415   : > { %1700 = vmatprep.subr.bf16.mxu0 %v2028_v14 }
 0x4da   : > { %v889_v50 = vpop.f32.mrb[0].mxu0 }
 0x4db   : > { %v894_v54 = vadd.f32 %v889_v50, %v576_v46  ;;  %v891_v55 = vpop.f32.mrb[1].mxu0 }
 0x4dc   : > { %v895_v56 = vadd.f32 %v891_v55, %v578_v49 }
 0x4dd   : > { %v1568_v57 = vmul.f32 -1.442695, %v894_v54 }
 0x4de   : > { %v1569_v0 = vmul.f32 -1.442695, %v895_v56 }
 0x4df   : > { %1827 = vpow2.f32 %v1568_v57 }
 0x4e0   : > { %1829 = vtanh.f32 %v895_v56 }
 0x4e9   : > { %v1828_v58 = vpop.eup %1827 }
 0x4ea   : > { %v899_v60 = vadd.f32 1.0, %v1828_v58  ;;  %v1830_v61 = vpop.eup %1829  ;;  %v594_v58 = vadd.f32 %v2156_v51, %v2160_v53  ;;  %v1218_v51 = vld [vmem:[%s2295_s4] sm:$0xff]  ;;  %v1220_v53 = vld [vmem:[%s2295_s4 + $0x10] sm:$0xff] }
 0x4ec   : > { %1831 = vrcp.f32 %v899_v60  ;;  %v596_v60 = vadd.f32 %v2158_v52, %v2163_v59  ;;  %v1219_v52 = vld [vmem:[%s2295_s4 + $0x8] sm:$0xff] }
 0x4ed   : > { %1833 = vpow2.f32 %v1569_v0 }
 0x4f6   : > { %v1832_v62 = vpop.eup %1831 }
 0x4f7   : > { %v910_v63 = vmul.f32 %v1832_v62, %v1830_v61  ;;  %v1834_v41 = vpop.eup %1833  ;;  %v909_v42 = vmul.f32 %v1832_v62, %v815_v36 }
 0x4f8   : > { %v906_v1 = vadd.f32 1.0, %v1834_v41 }
 0x4f9   : > { %912 = vrot.lane.b32.xlu1 %v910_v63, %s1900_s30 }
 0x4fa   : > { %1835 = vrcp.f32 %v906_v1 }
 0x504   : > { %v1836_v4 = vpop.eup %1835 }
 0x56b   : > { %v913_v2 = vpop.permute.xlu1 %912 }
 0x56c   : > { %v915_v3 = vadd.f32 %v913_v2, %v909_v42 }
 0x56e   : > { %1837 = vtanh.f32 %v915_v3 }
 0x578   : > { %v1838_v5 = vpop.eup %1837 }
 0x579   : > { %v917_v6 = vmul.f32 %v1838_v5, %v1836_v4  ;;  %v1732_v5 = vpack.c.bf16 %v1219_v52, %v1218_v51 }
 0x57b   : > { %919 = vrot.lane.b32.xlu0 %v917_v6, %s1900_s30  ;;  %v1221_v6 = vld [vmem:[%s2295_s4 + $0x18] sm:$0xff] }
 0x5ed   : > { %v920_v7 = vpop.permute.xlu0 %919 }
 0x5ee   : > { %1570 = vmatmul.mubr.msk.f32.vlgmr.msra.gmra.mrb[2].mxu0 %vm615_vm1, %v920_v7  ;;  %v1735_v7 = vpack.c.bf16 %v1221_v6, %v1220_v53 }
 0x5ef   : > { %1702 = vmatpush1.bf16.msra.mxu0 %v2030_v15  ;;  %1087 = vmatprep.mubr.f32.mxu0 %v1899_v10 }
 0x5f0   : > { %1704 = vmatprep.subr.bf16.mxu0 %v2039_v18 }
 0x5f3   : > { %1706 = vmatpush1.bf16.msra.mxu0 %v2069_v25 }
 0x5f4   : > { %1708 = vmatprep.subr.bf16.mxu0 %v2073_v26 }
 0x5f7   : > { %1710 = vmatpush1.bf16.msra.mxu0 %v2098_v33 }
 0x5f8   : > { %1712 = vmatprep.subr.bf16.mxu0 %v2101_v34 }
 0x5fb   : > { %1714 = vmatpush1.bf16.msra.mxu0 %v2115_v38 }
 0x5fc   : > { %1716 = vmatprep.subr.bf16.mxu0 %v2028_v14 }
 0x6c1   : > { %v989_v11 = vpop.f32.mrb[2].mxu0 }
 0x6c2   : > { %v994_v12 = vadd.f32 %v989_v11, %v582_v8  ;;  %v991_v13 = vpop.f32.mrb[3].mxu0  ;;  %v1222_v8 = vld [vmem:[%s2295_s4 + $0x20] sm:$0xff] }
 0x6c3   : > { %v995_v16 = vadd.f32 %v991_v13, %v584_v9  ;;  %v1223_v9 = vld [vmem:[%s2295_s4 + $0x28] sm:$0xff]  ;;  %v1225_v13 = vld [vmem:[%s2295_s4 + $0x38] sm:$0xff] }
 0x6c4   : > { %v1571_v17 = vmul.f32 -1.442695, %v994_v12  ;;  %v1738_v11 = vpack.c.bf16 %v1223_v9, %v1222_v8  ;;  %v1224_v12 = vld [vmem:[%s2295_s4 + $0x30] sm:$0xff] }
 0x6c5   : > { %v1572_v14 = vmul.f32 -1.442695, %v995_v16 }
 0x6c6   : > { %1839 = vpow2.f32 %v1571_v17 }
 0x6c7   : > { %1841 = vtanh.f32 %v995_v16  ;;  %v1741_v16 = vpack.c.bf16 %v1225_v13, %v1224_v12 }
 0x6d0   : > { %v1840_v19 = vpop.eup %1839 }
 0x6d1   : > { %v999_v20 = vadd.f32 1.0, %v1840_v19  ;;  %v1842_v21 = vpop.eup %1841 }
 0x6d3   : > { %1843 = vrcp.f32 %v999_v20 }
 0x6d4   : > { %1845 = vpow2.f32 %v1572_v14 }
 0x6dd   : > { %v1844_v22 = vpop.eup %1843 }
 0x6de   : > { %v1010_v23 = vmul.f32 %v1844_v22, %v1842_v21  ;;  %v1846_v44 = vpop.eup %1845  ;;  %v1009_v45 = vmul.f32 %v1844_v22, %v915_v3 }
 0x6df   : > { %v1006_v24 = vadd.f32 1.0, %v1846_v44 }
 0x6e0   : > { %1012 = vrot.lane.b32.xlu1 %v1010_v23, %s1900_s30 }
 0x6e1   : > { %1847 = vrcp.f32 %v1006_v24 }
 0x6eb   : > { %v1848_v29 = vpop.eup %1847 }
 0x752   : > { %v1013_v27 = vpop.permute.xlu1 %1012 }
 0x753   : > { %v1015_v28 = vadd.f32 %v1013_v27, %v1009_v45  ;;  %v1309_v27 = vld [vmem:[%s2297_s6] sm:$0xff] }
 0x755   : > { %1849 = vtanh.f32 %v1015_v28 }
 0x75f   : > { %v1850_v30 = vpop.eup %1849 }
 0x760   : > { %v1017_v31 = vmul.f32 %v1850_v30, %v1848_v29  ;;  %v1579_v30 = vld [vmem:[%s2296_s5] ss:$0 sm:$0xff] }
 0x762   : > { %1019 = vrot.lane.b32.xlu0 %v1017_v31, %s1900_s30 }
 0x7d4   : > { %v1020_v32 = vpop.permute.xlu0 %1019 }
 0x7d5   : > { %1573 = vmatmul.mubr.msk.f32.vlgmr.msra.gmra.mrb[4].mxu0 %vm615_vm1, %v1020_v32 }
 0x7d6   : > { %1718 = vmatpush1.bf16.msra.mxu0 %v2030_v15  ;;  %1187 = vmatprep.mubr.f32.mxu0 %v1899_v10  ;;  %v590_v15 = vadd.f32 %v2151_v48, %v2163_v59  ;;  %v1901_v59 = vmov 0.0|0.0  }
 0x7d7   : > { %1720 = vmatprep.subr.bf16.mxu0 %v2039_v18  ;;  %1731 = vmatprep.subr.bf16.mxu1 %v1901_v59 }
 0x7d8   : > { %1733 = vmatpush3.bf16.msra.mxu1 %v1732_v5 }
 0x7d9   : > { %1734 = vmatprep.subr.bf16.mxu1 %v1901_v59 }
 0x7da   : > { %1722 = vmatpush1.bf16.msra.mxu0 %v2069_v25 }
 0x7db   : > { %1724 = vmatprep.subr.bf16.mxu0 %v2073_v26 }
 0x7dc   : > { %1736 = vmatpush3.bf16.msra.mxu1 %v1735_v7 }
 0x7dd   : > { %1737 = vmatprep.subr.bf16.mxu1 %v1901_v59 }
 0x7de   : > { %1726 = vmatpush1.bf16.msra.mxu0 %v2098_v33 }
 0x7df   : > { %1728 = vmatprep.subr.bf16.mxu0 %v2101_v34 }
 0x7e0   : > { %1739 = vmatpush3.bf16.msra.mxu1 %v1738_v11 }
 0x7e1   : > { %1740 = vmatprep.subr.bf16.mxu1 %v1901_v59 }
 0x7e2   : > { %1730 = vmatpush1.bf16.msra.mxu0 %v2115_v38 }
 0x7e4   : > { %1742 = vmatpush3.bf16.msra.mxu1 %v1741_v16 }
 0x7e5   : > { %1743 = vmatprep.subr.bf16.mxu1 %v1901_v59 }
 0x8a8   : > { %v1089_v36 = vpop.f32.mrb[4].mxu0 }
 0x8a9   : > { %v1094_v37 = vadd.f32 %v1089_v36, %v588_v35  ;;  %v1091_v39 = vpop.f32.mrb[5].mxu0  ;;  %v1393_v36 = vld [vmem:[%s2299_s8] sm:$0xff] }
 0x8aa   : > { %v1095_v18 = vadd.f32 %v1091_v39, %v590_v15 }
 0x8ab   : > { %v1574_v40 = vmul.f32 -1.442695, %v1094_v37  ;;  %v1394_v37 = vld [vmem:[%s2299_s8 + $0x8] sm:$0xff] }
 0x8ac   : > { %v1575_v38 = vmul.f32 -1.442695, %v1095_v18  ;;  %v1747_v39 = vpack.c.bf16 %v1394_v37, %v1393_v36 }
 0x8ad   : > { %1851 = vpow2.f32 %v1574_v40 }
 0x8ae   : > { %1853 = vtanh.f32 %v1095_v18  ;;  %v1581_v18 = vld [vmem:[%s2298_s7] ss:$0 sm:$0xff] }
 0x8b7   : > { %v1852_v25 = vpop.eup %1851 }
 0x8b8   : > { %v1099_v26 = vadd.f32 1.0, %v1852_v25  ;;  %v1854_v33 = vpop.eup %1853 }
 0x8ba   : > { %1855 = vrcp.f32 %v1099_v26 }
 0x8bb   : > { %1857 = vpow2.f32 %v1575_v38 }
 0x8c4   : > { %v1856_v34 = vpop.eup %1855 }
 0x8c5   : > { %v1110_v43 = vmul.f32 %v1856_v34, %v1854_v33  ;;  %v1858_v47 = vpop.eup %1857  ;;  %v1109_v48 = vmul.f32 %v1856_v34, %v1015_v28  ;;  %v1310_v28 = vld [vmem:[%s2297_s6 + $0x8] sm:$0xff] }
 0x8c6   : > { %v1106_v46 = vadd.f32 1.0, %v1858_v47  ;;  %v1744_v29 = vpack.c.bf16 %v1310_v28, %v1309_v27 }
 0x8c7   : > { %1112 = vrot.lane.b32.xlu1 %v1110_v43, %s1900_s30 }
 0x8c8   : > { %1859 = vrcp.f32 %v1106_v46 }
 0x8d2   : > { %v1860_v54 = vpop.eup %1859 }
 0x939   : > { %v1113_v49 = vpop.permute.xlu1 %1112 }
 0x93a   : > { %v1115_v50 = vadd.f32 %v1113_v49, %v1109_v48 }
 0x93c   : > { %1861 = vtanh.f32 %v1115_v50 }
 0x946   : > { %v1862_v55 = vpop.eup %1861 }
 0x947   : > { %v1117_v56 = vmul.f32 %v1862_v55, %v1860_v54 }
 0x949   : > { %1119 = vrot.lane.b32.xlu0 %v1117_v56, %s1900_s30 }
 0x9bb   : > { %v1120_v57 = vpop.permute.xlu0 %1119 }
 0x9bc   : > { %1576 = vmatmul.mubr.msk.f32.vlgmr.msra.gmra.mrb[6].mxu0 %vm615_vm1, %v1120_v57 }
 0xa8f   : > { %v1189_v61 = vpop.f32.mrb[6].mxu0 }
 0xa90   : > { %v1194_v62 = vadd.f32 %v1189_v61, %v594_v58  ;;  %v1191_v63 = vpop.f32.mrb[7].mxu0 }
 0xa91   : > { %v1195_v0 = vadd.f32 %v1191_v63, %v596_v60 }
 0xa92   : > { %v1577_v41 = vmul.f32 -1.442695, %v1194_v62 }
 0xa93   : > { %v1578_v17 = vmul.f32 -1.442695, %v1195_v0 }
 0xa94   : > { %1863 = vpow2.f32 %v1577_v41 }
 0xa95   : > { %1865 = vtanh.f32 %v1195_v0 }
 0xa9e   : > { %v1864_v1 = vpop.eup %1863 }
 0xa9f   : > { %v1199_v42 = vadd.f32 1.0, %v1864_v1  ;;  %v1866_v2 = vpop.eup %1865 }
 0xaa1   : > { %1867 = vrcp.f32 %v1199_v42 }
 0xaa2   : > { %1869 = vpow2.f32 %v1578_v17 }
 0xaab   : > { %v1868_v3 = vpop.eup %1867 }
 0xaac   : > { %v1210_v4 = vmul.f32 %v1868_v3, %v1866_v2  ;;  %v1870_v19 = vpop.eup %1869  ;;  %v1209_v21 = vmul.f32 %v1868_v3, %v1115_v50 }
 0xaad   : > { %v1206_v20 = vadd.f32 1.0, %v1870_v19 }
 0xaae   : > { %1212 = vrot.lane.b32.xlu1 %v1210_v4, %s1900_s30 }
 0xaaf   : > { %1871 = vrcp.f32 %v1206_v20 }
 0xab9   : > { %v1872_v14 = vpop.eup %1871 }
 0xb20   : > { %v1213_v22 = vpop.permute.xlu1 %1212 }
 0xb21   : > { %v1215_v23 = vadd.f32 %v1213_v22, %v1209_v21 }
 0xb23   : > { %1873 = vtanh.f32 %v1215_v23 }
 0xb2d   : > { %v1874_v44 = vpop.eup %1873 }
 0xb2e   : > { %v1217_v24 = vmul.f32 %v1874_v44, %v1872_v14 }
 0xb30   : > { %1234 = vrot.lane.b32.xlu0 %v1217_v24, %s1900_s30 }
 0xba2   : > { %v1235_v45 = vpop.permute.xlu0 %1234 }
 0xba3   : > { %1619 = vmatmul.mubr.msk.f32.vlgmr.msra.gmra.mrb[12].mxu1 %vm615_vm1, %v1235_v45 }
 0xba4   : > { %1625 = vmatprep.mubr.msk.f32.mxu1 %vm1902_vm2, %v1899_v10  ;;  %1745 = vmatpush3.bf16.msra.mxu1 %v1744_v29 }
 0xba5   : > { %1746 = vmatprep.subr.bf16.mxu1 %v1901_v59 }
 0xc76   : > { %v1304_v31 = vpop.f32.mrb[12].mxu1 }
 0xc77   : > { %v1305_v32 = vadd.f32 %v1579_v30, %v1304_v31  ;;  %v1620_v35 = vpop.f32.mrb[13].mxu1 }
 0xc79   : > { %v1308_v15 = vmax.f32 %v1305_v32, 0.0 }
 0xc7b   : > { %1626 = vmatmul.mubr.msk.f32.vlgmr.msra.gmra.mrb[14].mxu1 %vm1318_vm3, %v1308_v15 }
 0xc7c   : > { %1632 = vmatprep.mubr.msk.f32.mxu1 %vm1902_vm2, %v1899_v10  ;;  %1748 = vmatpush3.bf16.msra.mxu1 %v1747_v39  ;;  %v1583_v10 = vld [vmem:[#allocation2] ss:$0 sm:$0xff] }
 0xd4e   : > { %v1388_v40 = vpop.f32.mrb[14].mxu1 }
 0xd4f   : > { %v1389_v25 = vadd.f32 %v1581_v18, %v1388_v40  ;;  %v1627_v26 = vpop.f32.mrb[15].mxu1 }
 0xd51   : > { %v1392_v33 = vmax.f32 %v1389_v25, 0.0 }
 0xd53   : > { %1633 = vmatmul.mubr.msk.f32.vlgmr.msra.gmra.mrb[16].mxu1 %vm1318_vm3, %v1392_v33 }
 0xe26   : > { %v1471_v34 = vpop.f32.mrb[16].mxu1 }
 0xe27   : > { %v1472_v43 = vadd.f32 %v1583_v10, %v1471_v34  ;;  %v1634_v38 = vpop.f32.mrb[17].mxu1 }
 0xe29   : > { %1476 = vst.msk [vmem:[%s457_s16] sm:$0xff] %vm1475_vm4, %v1472_v43 }
 0xe2a PF: > { %p20_p9 = scmp.ge.s32.totalorder %s1983_s22, 4   ;;  %s2304_s19 = smov %s1893_s20 }
 0xe2b   : > { %s2305_s20 = smov %s1992_s25  ;;  %s2306_s21 = smov %s1983_s22 }
 0xe2c   :  { %22 = sbr.rel (!%p20_p9) target bundleno = 5 (0x5), region = 140 }

</bundles_post_ra>
